<compile_context>
chip_gen: v5e
topology: v5e:2x2
jax: 0.10.0
libtpu: 0.0.40
codegen_flags: <defaults>
</compile_context>

<pallas_src>
import functools

import jax
import jax.numpy as jnp
from jax.experimental import pallas as pl
from jax.experimental.pallas import tpu as pltpu


def _round_up(n: int, m: int) -> int:
    return ((n + m - 1) // m) * m


def _cdiv(a: int, b: int) -> int:
    return -(-a // b)


def _pad2d(a, rows: int, cols: int):
    r, c = a.shape
    return jnp.pad(a, ((0, rows - r), (0, cols - c)))


def _vmem_capacity_bytes() -> int:
    try:
        cap = int(pltpu.get_tpu_info().vmem_capacity_bytes)
        if cap > 0:
            return cap
    except Exception:
        pass
    return 64 << 20  # conservative default: v7x per-TensorCore VMEM


# ----------------------------------------------------------------------------
# Kernel
# ----------------------------------------------------------------------------
def _actor_mu_kernel(x_ref, w1_ref, b1_ref, w2_ref, b2_ref, w3_ref, b3_ref, mu_ref):
    # Layer 1: Linear + ReLU (MXU matmul, f32 accumulation).
    a = jnp.dot(x_ref[...], w1_ref[...], preferred_element_type=jnp.float32)
    a = jnp.maximum(a + b1_ref[...], 0.0)
    # Layer 2: Linear + ReLU.
    a = jnp.dot(a.astype(w2_ref.dtype), w2_ref[...],
                preferred_element_type=jnp.float32)
    a = jnp.maximum(a + b2_ref[...], 0.0)
    # mu head: Linear + sigmoid (exp / recip land on the EUP slot).
    z = jnp.dot(a.astype(w3_ref.dtype), w3_ref[...],
                preferred_element_type=jnp.float32)
    mu_ref[...] = jax.nn.sigmoid(z + b3_ref[...]).astype(mu_ref.dtype)


# ----------------------------------------------------------------------------
# One-time parameter preparation (pad + cast once, not per call)
# ----------------------------------------------------------------------------
def prepare_params(params, *, use_bf16=None):
    """Pad / cast weights once. Returns (padded_params_dict, meta_dict)."""
    w1, b1 = params["w1"], params["b1"]
    w2, b2 = params["w2"], params["b2"]
    w3, b3 = params["w3"], params["b3"]
    state_dim, net_width = w1.shape
    action_dim = w3.shape[1]

    Hp = _round_up(net_width, 128)   # lane-aligned hidden dim
    Ap = _round_up(action_dim, 128)  # lane-dense output dim

    vmem_cap = _vmem_capacity_bytes()
    usable = int(vmem_cap * 0.8)     # headroom for Mosaic internal scratch/spills
    num_cores = 2 if vmem_cap <= (64 << 20) else 1  # v7x: 2 TCs @ 64 MiB each

    if use_bf16 is None:
        # Auto-downcast weights when the f32 resident footprint gets large.
        w_elems_f32 = _round_up(state_dim, 8) * Hp + Hp * Hp + Hp * Ap
        use_bf16 = (w_elems_f32 * 4) > (usable // 3)

    dtype = jnp.bfloat16 if use_bf16 else jnp.float32
    sub = 16 if use_bf16 else 8
    itemsize = jnp.dtype(dtype).itemsize
    Kp = max(_round_up(state_dim, sub), sub)  # sublane-aligned contraction dim

    w_elems = Kp * Hp + Hp * Hp + Hp * Ap
    w_bytes = w_elems * itemsize + (2 * Hp + Ap) * 4  # single-buffered W + f32 b
    if w_bytes > usable:
        # TODO(synk): tile Hp with an extra 'arbitrary' grid axis + f32 VMEM
        # accumulator for nets whose resident weights exceed VMEM.
        raise ValueError(
            f"net_width={net_width}: resident weights ({w_bytes / 2**20:.1f} MiB) "
            f"exceed the VMEM budget ({usable / 2**20:.1f} MiB) even in bf16.")

    padded = {
        "w1": _pad2d(w1, Kp, Hp).astype(dtype),
        "b1": _pad2d(b1.reshape(1, -1), 1, Hp).astype(jnp.float32),
        "w2": _pad2d(w2, Hp, Hp).astype(dtype),
        "b2": _pad2d(b2.reshape(1, -1), 1, Hp).astype(jnp.float32),
        "w3": _pad2d(w3, Hp, Ap).astype(dtype),
        "b3": _pad2d(b3.reshape(1, -1), 1, Ap).astype(jnp.float32),
    }
    meta = {
        "state_dim": int(state_dim), "action_dim": int(action_dim),
        "Kp": Kp, "Hp": Hp, "Ap": Ap,
        "itemsize": itemsize, "sub": sub,
        "w_bytes": w_bytes, "usable_vmem": usable, "num_cores": num_cores,
    }
    return padded, meta


def _pick_tiling(B, meta, tb_max):
    """Choose batch tile TB, grid length and vmem_limit from the VMEM budget."""
    sub, Kp, Hp, Ap = meta["sub"], meta["Kp"], meta["Hp"], meta["Ap"]
    itemsize, usable = meta["itemsize"], meta["usable_vmem"]
    num_cores, w_bytes = meta["num_cores"], meta["w_bytes"]

    # Bytes per batch row: double-buffered x/out tiles + f32 intermediates.
    per_row = 2 * (Kp * itemsize + Ap * 4) + 4 * Hp * 4
    avail = max(usable - w_bytes - (4 << 20), per_row * sub)
    tb_cap = max((avail // per_row) // sub * sub, sub)
    tb_cap = min(tb_cap, max((tb_max // sub) * sub, sub))

    n = _cdiv(B, tb_cap)
    if num_cores > 1 and B >= num_cores * sub:
        # Keep the grid a multiple of the TC count so 'parallel' load-balances.
        n = _round_up(max(n, num_cores), num_cores)
    TB = min(_round_up(_cdiv(B, n), sub), tb_cap)
    n = _cdiv(B, TB)
    if num_cores > 1 and n > 1:
        n = _round_up(n, num_cores)

    # Derive vmem_limit from actual buffer sizes + headroom; never full VMEM.
    needed = (w_bytes + 2 * TB * (Kp * itemsize + Ap * 4)
              + 4 * TB * Hp * 4 + (8 << 20))
    vmem_limit = int(min(usable, max(needed, 32 << 20)))
    return TB, n, vmem_limit


# ----------------------------------------------------------------------------
# Forward
# ----------------------------------------------------------------------------
@functools.partial(
    jax.jit,
    static_argnames=("TB", "grid_n", "Kp", "Hp", "Ap", "action_dim",
                     "vmem_limit", "single_buffer"))
def _fwd_impl(state, w1, b1, w2, b2, w3, b3, *, TB, grid_n, Kp, Hp, Ap,
              action_dim, vmem_limit, single_buffer):
    B, sd = state.shape
    Bp = TB * grid_n
    x = _pad2d(state.astype(w1.dtype), Bp, Kp)

    itemsize = jnp.dtype(w1.dtype).itemsize
    flops = 2 * Bp * (Kp * Hp + Hp * Hp + Hp * Ap)
    bytes_accessed = (Bp * Kp * itemsize
                      + (Kp * Hp + Hp * Hp + Hp * Ap) * itemsize
                      + (2 * Hp + Ap) * 4
                      + Bp * Ap * 4)
    cost = pl.CostEstimate(flops=flops, transcendentals=Bp * Ap,
                           bytes_accessed=bytes_accessed)

    def _resident(shape):
        # Constant block index -> fetched once, stays VMEM-resident.
        if single_buffer:
            return pl.BlockSpec(shape, lambda i: (0, 0),
                                pipeline_mode=pl.Buffered(1))
        return pl.BlockSpec(shape, lambda i: (0, 0))

    out = pl.pallas_call(
        _actor_mu_kernel,
        out_shape=jax.ShapeDtypeStruct((Bp, Ap), jnp.float32),
        grid=(grid_n,),
        in_specs=[
            # state tile: pipelined (double-buffered) along the batch grid.
            pl.BlockSpec((TB, Kp), lambda i: (i, 0)),
            _resident((Kp, Hp)), _resident((1, Hp)),
            _resident((Hp, Hp)), _resident((1, Hp)),
            _resident((Hp, Ap)), _resident((1, Ap)),
        ],
        out_specs=pl.BlockSpec((TB, Ap), lambda i: (i, 0)),
        compiler_params=pltpu.CompilerParams(
            dimension_semantics=("parallel",),  # shard batch tiles across TCs
            vmem_limit_bytes=vmem_limit,
        ),
        cost_estimate=cost,
    )(x, w1, b1, w2, b2, w3, b3)

    # Strip batch and lane padding outside the kernel.
    return out[:B, :action_dim]


_SINGLE_BUFFER_OK = True  # flipped off if this JAX build rejects pl.Buffered(1)


def gaussian_actor_mu_forward(state, padded, meta, *, tb_max=4096,
                              single_buffer_weights=None):
    """Fused MLP forward. state: (B, state_dim) -> mu: (B, action_dim) f32."""
    global _SINGLE_BUFFER_OK
    if single_buffer_weights is None:
        single_buffer_weights = _SINGLE_BUFFER_OK

    B = state.shape[0]
    TB, grid_n, vmem_limit = _pick_tiling(B, meta, tb_max)
    kwargs = dict(TB=TB, grid_n=grid_n, Kp=meta["Kp"], Hp=meta["Hp"],
                  Ap=meta["Ap"], action_dim=meta["action_dim"],
                  vmem_limit=vmem_limit)
    args = (state, padded["w1"], padded["b1"], padded["w2"], padded["b2"],
            padded["w3"], padded["b3"])
    try:
        return _fwd_impl(*args, single_buffer=single_buffer_weights, **kwargs)
    except Exception:
        if not single_buffer_weights:
            raise
        _SINGLE_BUFFER_OK = False  # fall back to default double-buffered specs
        return _fwd_impl(*args, single_buffer=False, **kwargs)


# ----------------------------------------------------------------------------
# Parameter init (matches PyTorch nn.Linear defaults + mu_head scaling)
# ----------------------------------------------------------------------------
def init_params(key, state_dim, net_width, action_dim, log_std=0.0):
    k1, k2, k3, k4, k5, k6 = jax.random.split(key, 6)

    def lin(kw, kb, fan_in, fan_out):
        bound = 1.0 / jnp.sqrt(fan_in)
        # stored as (in, out) so the kernel computes x @ W
        w = jax.random.uniform(kw, (fan_in, fan_out), jnp.float32, -bound, bound)
        b = jax.random.uniform(kb, (1, fan_out), jnp.float32, -bound, bound)
        return w, b

    w1, b1 = lin(k1, k2, state_dim, net_width)
    w2, b2 = lin(k3, k4, net_width, net_width)
    w3, b3 = lin(k5, k6, net_width, action_dim)
    w3 = w3 * 0.1          # self.mu_head.weight.data.mul_(0.1)
    b3 = b3 * 0.0          # self.mu_head.bias.data.mul_(0.0)
    action_log_std = jnp.ones((1, action_dim), jnp.float32) * log_std  # unused in forward()
    return {"w1": w1, "b1": b1, "w2": w2, "b2": b2, "w3": w3, "b3": b3,
            "action_log_std": action_log_std}


def reference_forward(state, params):
    a = jnp.maximum(state @ params["w1"] + params["b1"], 0.0)
    a = jnp.maximum(a @ params["w2"] + params["b2"], 0.0)
    return jax.nn.sigmoid(a @ params["w3"] + params["b3"])


if __name__ == "__main__":
    key = jax.random.PRNGKey(0)
    k_param, k_state, k_state2 = jax.random.split(key, 3)

    batch, state_dim, net_width, action_dim = 2, 8, 32, 4
    params = init_params(k_param, state_dim, net_width, action_dim, log_std=0.0)

    # f32 path, small batch (single grid step).
    padded, meta = prepare_params(params, use_bf16=False)
    state = jax.random.normal(k_state, (batch, state_dim), jnp.float32)
    mu = jax.block_until_ready(gaussian_actor_mu_forward(state, padded, meta))
    ref = reference_forward(state, params)
    assert mu.shape == (batch, action_dim)
    assert jnp.allclose(mu, ref, atol=1e-5, rtol=1e-5), "mismatch vs reference (small)"

    # Larger batch: exercises batch padding + the multi-tile / balanced grid.
    big_batch = 600
    state_big = jax.random.normal(k_state2, (big_batch, state_dim), jnp.float32)
    mu_big = jax.block_until_ready(gaussian_actor_mu_forward(state_big, padded, meta))
    ref_big = reference_forward(state_big, params)
    assert mu_big.shape == (big_batch, action_dim)
    assert jnp.allclose(mu_big, ref_big, atol=1e-5, rtol=1e-5), "mismatch vs reference (big)"

    # bf16 weight/activation path (expected precision loss -> looser tolerance).
    padded_bf16, meta_bf16 = prepare_params(params, use_bf16=True)
    mu_bf16 = jax.block_until_ready(
        gaussian_actor_mu_forward(state_big, padded_bf16, meta_bf16))
    assert mu_bf16.shape == (big_batch, action_dim)
    assert jnp.allclose(mu_bf16, ref_big, atol=3e-2, rtol=3e-2), "mismatch vs reference (bf16)"

    print("KERNEL_OK")
</pallas_src>

<mosaic_0001>
module attributes {stable_mosaic.version = 11 : i64} {
  func.func @_actor_mu_kernel(%arg0: i32, %arg1: memref<8x8xf32, #tpu.memory_space<vmem>>, %arg2: memref<8x128xf32, #tpu.memory_space<vmem>>, %arg3: memref<1x128xf32, #tpu.memory_space<vmem>>, %arg4: memref<128x128xf32, #tpu.memory_space<vmem>>, %arg5: memref<1x128xf32, #tpu.memory_space<vmem>>, %arg6: memref<128x128xf32, #tpu.memory_space<vmem>>, %arg7: memref<1x128xf32, #tpu.memory_space<vmem>>, %arg8: memref<8x128xf32, #tpu.memory_space<vmem>>) attributes {dimension_semantics = [#tpu.dimension_semantics<parallel>], iteration_bounds = array<i64: 1>, scalar_prefetch = 0 : i64, scratch_operands = 0 : i64, tpu.core_type = #tpu.core_type<tc>, window_params = [{transform_indices = @transform_0, window_bounds = array<i64: 8, 8>}, {pipeline_mode = #tpu.pipeline_mode<synchronous>, transform_indices = @transform_1, window_bounds = array<i64: 8, 128>}, {pipeline_mode = #tpu.pipeline_mode<synchronous>, transform_indices = @transform_2, window_bounds = array<i64: 1, 128>}, {pipeline_mode = #tpu.pipeline_mode<synchronous>, transform_indices = @transform_3, window_bounds = array<i64: 128, 128>}, {pipeline_mode = #tpu.pipeline_mode<synchronous>, transform_indices = @transform_4, window_bounds = array<i64: 1, 128>}, {pipeline_mode = #tpu.pipeline_mode<synchronous>, transform_indices = @transform_5, window_bounds = array<i64: 128, 128>}, {pipeline_mode = #tpu.pipeline_mode<synchronous>, transform_indices = @transform_6, window_bounds = array<i64: 1, 128>}, {transform_indices = @transform_7, window_bounds = array<i64: 8, 128>}]} {
    %c0 = arith.constant 0 : index
    %c0_0 = arith.constant 0 : index
    %0 = vector.load %arg1[%c0, %c0_0] : memref<8x8xf32, #tpu.memory_space<vmem>>, vector<8x8xf32>
    %c0_1 = arith.constant 0 : index
    %c0_2 = arith.constant 0 : index
    %1 = vector.load %arg2[%c0_1, %c0_2] : memref<8x128xf32, #tpu.memory_space<vmem>>, vector<8x128xf32>
    %cst = arith.constant dense<0.000000e+00> : vector<8x128xf32>
    %2 = tpu.matmul %0, %1, %cst {dimension_numbers = #tpu.dot_dimension_numbers<[1], [0], [0], [1], [0, 0, 1, 1], [], []>} : vector<8x8xf32>, vector<8x128xf32>, vector<8x128xf32> -> vector<8x128xf32>
    %c0_3 = arith.constant 0 : index
    %c0_4 = arith.constant 0 : index
    %3 = vector.load %arg3[%c0_3, %c0_4] : memref<1x128xf32, #tpu.memory_space<vmem>>, vector<1x128xf32>
    %4 = vector.broadcast %3 : vector<1x128xf32> to vector<8x128xf32>
    %5 = arith.addf %2, %4 : vector<8x128xf32>
    %cst_5 = arith.constant 0.000000e+00 : f32
    %6 = vector.broadcast %cst_5 : f32 to vector<8x128xf32>
    %7 = arith.maximumf %5, %6 : vector<8x128xf32>
    %c0_6 = arith.constant 0 : index
    %c0_7 = arith.constant 0 : index
    %8 = vector.load %arg4[%c0_6, %c0_7] : memref<128x128xf32, #tpu.memory_space<vmem>>, vector<128x128xf32>
    %cst_8 = arith.constant dense<0.000000e+00> : vector<8x128xf32>
    %9 = tpu.matmul %7, %8, %cst_8 {dimension_numbers = #tpu.dot_dimension_numbers<[1], [0], [0], [1], [0, 0, 1, 1], [], []>} : vector<8x128xf32>, vector<128x128xf32>, vector<8x128xf32> -> vector<8x128xf32>
    %c0_9 = arith.constant 0 : index
    %c0_10 = arith.constant 0 : index
    %10 = vector.load %arg5[%c0_9, %c0_10] : memref<1x128xf32, #tpu.memory_space<vmem>>, vector<1x128xf32>
    %11 = vector.broadcast %10 : vector<1x128xf32> to vector<8x128xf32>
    %12 = arith.addf %9, %11 : vector<8x128xf32>
    %cst_11 = arith.constant 0.000000e+00 : f32
    %13 = vector.broadcast %cst_11 : f32 to vector<8x128xf32>
    %14 = arith.maximumf %12, %13 : vector<8x128xf32>
    %c0_12 = arith.constant 0 : index
    %c0_13 = arith.constant 0 : index
    %15 = vector.load %arg6[%c0_12, %c0_13] : memref<128x128xf32, #tpu.memory_space<vmem>>, vector<128x128xf32>
    %cst_14 = arith.constant dense<0.000000e+00> : vector<8x128xf32>
    %16 = tpu.matmul %14, %15, %cst_14 {dimension_numbers = #tpu.dot_dimension_numbers<[1], [0], [0], [1], [0, 0, 1, 1], [], []>} : vector<8x128xf32>, vector<128x128xf32>, vector<8x128xf32> -> vector<8x128xf32>
    %c0_15 = arith.constant 0 : index
    %c0_16 = arith.constant 0 : index
    %17 = vector.load %arg7[%c0_15, %c0_16] : memref<1x128xf32, #tpu.memory_space<vmem>>, vector<1x128xf32>
    %18 = vector.broadcast %17 : vector<1x128xf32> to vector<8x128xf32>
    %19 = arith.addf %16, %18 : vector<8x128xf32>
    %20 = arith.negf %19 : vector<8x128xf32>
    %21 = math.exp %20 : vector<8x128xf32>
    %cst_17 = arith.constant 1.000000e+00 : f32
    %22 = vector.broadcast %cst_17 : f32 to vector<8x128xf32>
    %23 = arith.addf %22, %21 : vector<8x128xf32>
    %24 = arith.divf %22, %23 : vector<8x128xf32>
    %c0_18 = arith.constant 0 : index
    %c0_19 = arith.constant 0 : index
    %25 = vector.load %arg8[%c0_18, %c0_19] : memref<8x128xf32, #tpu.memory_space<vmem>>, vector<8x128xf32>
    tpu.vector_store %arg8[%c0_18, %c0_19], %24 {strides = array<i32>} : memref<8x128xf32, #tpu.memory_space<vmem>>, vector<8x128xf32>,
    return
  }
  func.func @transform_0(%arg0: i32) -> (i32, i32) {
    %c0_i32 = arith.constant 0 : i32
    %c0_i32_0 = arith.constant 0 : i32
    return %arg0, %c0_i32 : i32, i32
  }
  func.func @transform_1(%arg0: i32) -> (i32, i32) {
    %c0_i32 = arith.constant 0 : i32
    %c0_i32_0 = arith.constant 0 : i32
    %c0_i32_1 = arith.constant 0 : i32
    return %c0_i32, %c0_i32_0 : i32, i32
  }
  func.func @transform_2(%arg0: i32) -> (i32, i32) {
    %c0_i32 = arith.constant 0 : i32
    %c0_i32_0 = arith.constant 0 : i32
    %c0_i32_1 = arith.constant 0 : i32
    return %c0_i32, %c0_i32_0 : i32, i32
  }
  func.func @transform_3(%arg0: i32) -> (i32, i32) {
    %c0_i32 = arith.constant 0 : i32
    %c0_i32_0 = arith.constant 0 : i32
    %c0_i32_1 = arith.constant 0 : i32
    return %c0_i32, %c0_i32_0 : i32, i32
  }
  func.func @transform_4(%arg0: i32) -> (i32, i32) {
    %c0_i32 = arith.constant 0 : i32
    %c0_i32_0 = arith.constant 0 : i32
    %c0_i32_1 = arith.constant 0 : i32
    return %c0_i32, %c0_i32_0 : i32, i32
  }
  func.func @transform_5(%arg0: i32) -> (i32, i32) {
    %c0_i32 = arith.constant 0 : i32
    %c0_i32_0 = arith.constant 0 : i32
    %c0_i32_1 = arith.constant 0 : i32
    return %c0_i32, %c0_i32_0 : i32, i32
  }
  func.func @transform_6(%arg0: i32) -> (i32, i32) {
    %c0_i32 = arith.constant 0 : i32
    %c0_i32_0 = arith.constant 0 : i32
    %c0_i32_1 = arith.constant 0 : i32
    return %c0_i32, %c0_i32_0 : i32, i32
  }
  func.func @transform_7(%arg0: i32) -> (i32, i32) {
    %c0_i32 = arith.constant 0 : i32
    %c0_i32_0 = arith.constant 0 : i32
    return %arg0, %c0_i32 : i32, i32
  }
}

module attributes {stable_mosaic.version = 11 : i64} {
  func.func @_actor_mu_kernel(%arg0: i32, %arg1: memref<8x8xf32, #tpu.memory_space<vmem>>, %arg2: memref<8x128xf32, #tpu.memory_space<vmem>>, %arg3: memref<1x128xf32, #tpu.memory_space<vmem>>, %arg4: memref<128x128xf32, #tpu.memory_space<vmem>>, %arg5: memref<1x128xf32, #tpu.memory_space<vmem>>, %arg6: memref<128x128xf32, #tpu.memory_space<vmem>>, %arg7: memref<1x128xf32, #tpu.memory_space<vmem>>, %arg8: memref<8x128xf32, #tpu.memory_space<vmem>>) attributes {dimension_semantics = [#tpu.dimension_semantics<parallel>], iteration_bounds = array<i64: 1>, scalar_prefetch = 0 : i64, scratch_operands = 0 : i64, tpu.core_type = #tpu.core_type<tc>, window_params = [{transform_indices = @transform_0, window_bounds = array<i64: 8, 8>}, {pipeline_mode = #tpu.pipeline_mode<synchronous>, transform_indices = @transform_1, window_bounds = array<i64: 8, 128>}, {pipeline_mode = #tpu.pipeline_mode<synchronous>, transform_indices = @transform_2, window_bounds = array<i64: 1, 128>}, {pipeline_mode = #tpu.pipeline_mode<synchronous>, transform_indices = @transform_3, window_bounds = array<i64: 128, 128>}, {pipeline_mode = #tpu.pipeline_mode<synchronous>, transform_indices = @transform_4, window_bounds = array<i64: 1, 128>}, {pipeline_mode = #tpu.pipeline_mode<synchronous>, transform_indices = @transform_5, window_bounds = array<i64: 128, 128>}, {pipeline_mode = #tpu.pipeline_mode<synchronous>, transform_indices = @transform_6, window_bounds = array<i64: 1, 128>}, {transform_indices = @transform_7, window_bounds = array<i64: 8, 128>}]} {
    %c0 = arith.constant 0 : index
    %c0_0 = arith.constant 0 : index
    %0 = vector.load %arg1[%c0, %c0_0] : memref<8x8xf32, #tpu.memory_space<vmem>>, vector<8x8xf32>
    %c0_1 = arith.constant 0 : index
    %c0_2 = arith.constant 0 : index
    %1 = vector.load %arg2[%c0_1, %c0_2] : memref<8x128xf32, #tpu.memory_space<vmem>>, vector<8x128xf32>
    %cst = arith.constant dense<0.000000e+00> : vector<8x128xf32>
    %2 = tpu.matmul %0, %1, %cst {dimension_numbers = #tpu.dot_dimension_numbers<[1], [0], [0], [1], [0, 0, 1, 1], [], []>} : vector<8x8xf32>, vector<8x128xf32>, vector<8x128xf32> -> vector<8x128xf32>
    %c0_3 = arith.constant 0 : index
    %c0_4 = arith.constant 0 : index
    %3 = vector.load %arg3[%c0_3, %c0_4] : memref<1x128xf32, #tpu.memory_space<vmem>>, vector<1x128xf32>
    %4 = vector.broadcast %3 : vector<1x128xf32> to vector<8x128xf32>
    %5 = arith.addf %2, %4 : vector<8x128xf32>
    %cst_5 = arith.constant 0.000000e+00 : f32
    %6 = vector.broadcast %cst_5 : f32 to vector<8x128xf32>
    %7 = arith.maximumf %5, %6 : vector<8x128xf32>
    %c0_6 = arith.constant 0 : index
    %c0_7 = arith.constant 0 : index
    %8 = vector.load %arg4[%c0_6, %c0_7] : memref<128x128xf32, #tpu.memory_space<vmem>>, vector<128x128xf32>
    %cst_8 = arith.constant dense<0.000000e+00> : vector<8x128xf32>
    %9 = tpu.matmul %7, %8, %cst_8 {dimension_numbers = #tpu.dot_dimension_numbers<[1], [0], [0], [1], [0, 0, 1, 1], [], []>} : vector<8x128xf32>, vector<128x128xf32>, vector<8x128xf32> -> vector<8x128xf32>
    %c0_9 = arith.constant 0 : index
    %c0_10 = arith.constant 0 : index
    %10 = vector.load %arg5[%c0_9, %c0_10] : memref<1x128xf32, #tpu.memory_space<vmem>>, vector<1x128xf32>
    %11 = vector.broadcast %10 : vector<1x128xf32> to vector<8x128xf32>
    %12 = arith.addf %9, %11 : vector<8x128xf32>
    %cst_11 = arith.constant 0.000000e+00 : f32
    %13 = vector.broadcast %cst_11 : f32 to vector<8x128xf32>
    %14 = arith.maximumf %12, %13 : vector<8x128xf32>
    %c0_12 = arith.constant 0 : index
    %c0_13 = arith.constant 0 : index
    %15 = vector.load %arg6[%c0_12, %c0_13] : memref<128x128xf32, #tpu.memory_space<vmem>>, vector<128x128xf32>
    %cst_14 = arith.constant dense<0.000000e+00> : vector<8x128xf32>
    %16 = tpu.matmul %14, %15, %cst_14 {dimension_numbers = #tpu.dot_dimension_numbers<[1], [0], [0], [1], [0, 0, 1, 1], [], []>} : vector<8x128xf32>, vector<128x128xf32>, vector<8x128xf32> -> vector<8x128xf32>
    %c0_15 = arith.constant 0 : index
    %c0_16 = arith.constant 0 : index
    %17 = vector.load %arg7[%c0_15, %c0_16] : memref<1x128xf32, #tpu.memory_space<vmem>>, vector<1x128xf32>
    %18 = vector.broadcast %17 : vector<1x128xf32> to vector<8x128xf32>
    %19 = arith.addf %16, %18 : vector<8x128xf32>
    %20 = arith.negf %19 : vector<8x128xf32>
    %21 = math.exp %20 : vector<8x128xf32>
    %cst_17 = arith.constant 1.000000e+00 : f32
    %22 = vector.broadcast %cst_17 : f32 to vector<8x128xf32>
    %23 = arith.addf %22, %21 : vector<8x128xf32>
    %24 = arith.divf %22, %23 : vector<8x128xf32>
    %c0_18 = arith.constant 0 : index
    %c0_19 = arith.constant 0 : index
    %25 = vector.load %arg8[%c0_18, %c0_19] : memref<8x128xf32, #tpu.memory_space<vmem>>, vector<8x128xf32>
    tpu.vector_store %arg8[%c0_18, %c0_19], %24 {strides = array<i32>} : memref<8x128xf32, #tpu.memory_space<vmem>>, vector<8x128xf32>,
    return
  }
  func.func @transform_0(%arg0: i32) -> (i32, i32) {
    %c0_i32 = arith.constant 0 : i32
    %c0_i32_0 = arith.constant 0 : i32
    return %arg0, %c0_i32 : i32, i32
  }
  func.func @transform_1(%arg0: i32) -> (i32, i32) {
    %c0_i32 = arith.constant 0 : i32
    %c0_i32_0 = arith.constant 0 : i32
    %c0_i32_1 = arith.constant 0 : i32
    return %c0_i32, %c0_i32_0 : i32, i32
  }
  func.func @transform_2(%arg0: i32) -> (i32, i32) {
    %c0_i32 = arith.constant 0 : i32
    %c0_i32_0 = arith.constant 0 : i32
    %c0_i32_1 = arith.constant 0 : i32
    return %c0_i32, %c0_i32_0 : i32, i32
  }
  func.func @transform_3(%arg0: i32) -> (i32, i32) {
    %c0_i32 = arith.constant 0 : i32
    %c0_i32_0 = arith.constant 0 : i32
    %c0_i32_1 = arith.constant 0 : i32
    return %c0_i32, %c0_i32_0 : i32, i32
  }
  func.func @transform_4(%arg0: i32) -> (i32, i32) {
    %c0_i32 = arith.constant 0 : i32
    %c0_i32_0 = arith.constant 0 : i32
    %c0_i32_1 = arith.constant 0 : i32
    return %c0_i32, %c0_i32_0 : i32, i32
  }
  func.func @transform_5(%arg0: i32) -> (i32, i32) {
    %c0_i32 = arith.constant 0 : i32
    %c0_i32_0 = arith.constant 0 : i32
    %c0_i32_1 = arith.constant 0 : i32
    return %c0_i32, %c0_i32_0 : i32, i32
  }
  func.func @transform_6(%arg0: i32) -> (i32, i32) {
    %c0_i32 = arith.constant 0 : i32
    %c0_i32_0 = arith.constant 0 : i32
    %c0_i32_1 = arith.constant 0 : i32
    return %c0_i32, %c0_i32_0 : i32, i32
  }
  func.func @transform_7(%arg0: i32) -> (i32, i32) {
    %c0_i32 = arith.constant 0 : i32
    %c0_i32_0 = arith.constant 0 : i32
    return %arg0, %c0_i32 : i32, i32
  }
}

</mosaic_0001>

<bundles_post_ra>
// kernel: _fwd_impl.1
= control target key start
LH: loop header
LB: loop body
LE: loop exit
PB: predicated region body
PF: predicated region fallthrough
CT: control target
= control target key end

     0   :  { %12 = vsyncpa [#allocation3], 0  ;;  %s329_s0 = inlined_call_operand.vmem [shape: f32[8,8], index: 0, kind: input, shape index: {}]   ;;  %s330_s1 = inlined_call_operand.vmem [shape: f32[8,128], index: 1, kind: input, shape index: {}]   ;;  %s331_s2 = inlined_call_operand.vmem [shape: f32[1,128], index: 2, kind: input, shape index: {}]   ;;  %s332_s3 = inlined_call_operand.hbm [shape: f32[128,128], index: 3, kind: input, shape index: {}]   ;;  %s333_s4 = inlined_call_operand.vmem [shape: f32[1,128], index: 4, kind: input, shape index: {}]   ;;  %s334_s5 = inlined_call_operand.hbm [shape: f32[128,128], index: 5, kind: input, shape index: {}]   ;;  %s335_s6 = inlined_call_operand.vmem [shape: f32[1,128], index: 6, kind: input, shape index: {}]   ;;  %s336_s7 = inlined_call_operand.vmem [shape: f32[8,128], index: 7, kind: output, shape index: {}]  }
   0x1   :  { %s24_s26 = sshll.u32 %s332_s3, 4  ;;  %s25_s26 = int_to_ptr.hbm [resolvable:$true] %s24_s26 }
   0x2   :  { %13 = vsyncpa [#allocation5], 0  ;;  %s261_s27 = smov [#allocation2]   ;;  %s39_s8 = sshll.u32 %s334_s5, 4  ;;  %s40_s8 = int_to_ptr.hbm [resolvable:$true] %s39_s8 }
   0x3   :  { %s26_s28 = sshll.u32 %s261_s27, 4  ;;  %s262_s9 = smov 128   ;;  %s27_s28 = int_to_ptr.vmem [resolvable:$true] %s26_s28 }
   0x4   :  { %s263_s10 = smov 8   ;;  %s264_s11 = smov [#allocation4]  }
   0x5   :  { %32 = dma.hbm_to_vmem [thread:$0]  %s25_s26, 2048, %s27_s28, [#allocation3], %s262_s9, %s262_s9, %s263_s10  }
   0x6   :  { %s41_s12 = sshll.u32 %s264_s11, 4  ;;  %s42_s12 = int_to_ptr.vmem [resolvable:$true] %s41_s12 }
   0x7   :  { %47 = dma.hbm_to_vmem [thread:$0]  %s40_s8, 2048, %s42_s12, [#allocation5], %s262_s9, %s262_s9, %s263_s10  }
   0x8   :  { %257 = dma.done.wait [#allocation3], 2048  }
   0x9   :  { %258 = vsyncadd [#allocation3], 4294965248 }
   0xa   :  { %259 = dma.done.wait [#allocation5], 2048  }
   0xb   :  { %260 = vsyncadd [#allocation5], 4294965248  ;;  %vm64_vm0 = vcmask 64512   ;;  %v59_v0 = vld [vmem:[%s330_s1] sm:$0xff]  ;;  %v104_v2 = vld [vmem:[#allocation2 + $0x78] sm:$0xff] }
   0xc   :  { %v58_v1 = vld [vmem:[%s329_s0] sm:$0xff]  ;;  %83 = vmatpush.msra.mxu0 %v59_v0  ;;  %109 = vmatpush.msra.mxu1 %v104_v2  ;;  %v103_v3 = vld [vmem:[#allocation2 + $0x70] sm:$0xff]  ;;  %v102_v4 = vld [vmem:[#allocation2 + $0x68] sm:$0xff] }
   0xd   :  { %196 = vmatmul.msk.f32.vlgmr.msra.gmra.mxu0 %vm64_vm0, %v58_v1  ;;  %v101_v5 = vld [vmem:[#allocation2 + $0x60] sm:$0xff]  ;;  %v100_v6 = vld [vmem:[#allocation2 + $0x58] sm:$0xff]  ;;  %v99_v7 = vld [vmem:[#allocation2 + $0x50] sm:$0xff] }
   0xe   :  { %110 = vmatpush.msra.mxu1 %v103_v3  ;;  %v98_v8 = vld [vmem:[#allocation2 + $0x48] sm:$0xff]  ;;  %v97_v9 = vld [vmem:[#allocation2 + $0x40] sm:$0xff]  ;;  %v96_v10 = vld [vmem:[#allocation2 + $0x38] sm:$0xff] }
   0xf   :  { %v95_v11 = vld [vmem:[#allocation2 + $0x30] sm:$0xff]  ;;  %v94_v12 = vld [vmem:[#allocation2 + $0x28] sm:$0xff]  ;;  %v93_v13 = vld [vmem:[#allocation2 + $0x20] sm:$0xff] }
  0x10   :  { %111 = vmatpush.msra.mxu1 %v102_v4  ;;  %v92_v14 = vld [vmem:[#allocation2 + $0x18] sm:$0xff]  ;;  %v91_v15 = vld [vmem:[#allocation2 + $0x10] sm:$0xff]  ;;  %v90_v16 = vld [vmem:[#allocation2 + $0x8] sm:$0xff] }
  0x11   :  { %v89_v17 = vld [vmem:[#allocation2] sm:$0xff]  ;;  %v145_v18 = vld [vmem:[#allocation4 + $0x78] sm:$0xff]  ;;  %v144_v19 = vld [vmem:[#allocation4 + $0x70] sm:$0xff] }
  0x12   :  { %112 = vmatpush.msra.mxu1 %v101_v5  ;;  %150 = vmatpush.msra.mxu2 %v145_v18  ;;  %v143_v20 = vld [vmem:[#allocation4 + $0x68] sm:$0xff]  ;;  %v142_v21 = vld [vmem:[#allocation4 + $0x60] sm:$0xff]  ;;  %v141_v22 = vld [vmem:[#allocation4 + $0x58] sm:$0xff] }
  0x13   :  { %v140_v23 = vld [vmem:[#allocation4 + $0x50] sm:$0xff]  ;;  %v139_v24 = vld [vmem:[#allocation4 + $0x48] sm:$0xff]  ;;  %v138_v25 = vld [vmem:[#allocation4 + $0x40] sm:$0xff] }
  0x14   :  { %113 = vmatpush.msra.mxu1 %v100_v6  ;;  %151 = vmatpush.msra.mxu2 %v144_v19  ;;  %v137_v26 = vld [vmem:[#allocation4 + $0x38] sm:$0xff]  ;;  %v136_v27 = vld [vmem:[#allocation4 + $0x30] sm:$0xff]  ;;  %v135_v28 = vld [vmem:[#allocation4 + $0x28] sm:$0xff] }
  0x15   :  { %v134_v29 = vld [vmem:[#allocation4 + $0x20] sm:$0xff]  ;;  %v133_v30 = vld [vmem:[#allocation4 + $0x18] sm:$0xff]  ;;  %v132_v35 = vld [vmem:[#allocation4 + $0x10] sm:$0xff] }
  0x16   :  { %114 = vmatpush.msra.mxu1 %v99_v7  ;;  %152 = vmatpush.msra.mxu2 %v143_v20  ;;  %v202_v31 = vld [vmem:[%s331_s2] ss:$0 sm:$0xff]  ;;  %v131_v36 = vld [vmem:[#allocation4 + $0x8] sm:$0xff] }
  0x17   :  { %v130_v37 = vld [vmem:[#allocation4] sm:$0xff] }
  0x18   :  { %115 = vmatpush.msra.mxu1 %v98_v8  ;;  %153 = vmatpush.msra.mxu2 %v142_v21  ;;  %v203_v38 = vld [vmem:[%s333_s4] ss:$0 sm:$0xff] }
  0x19   :  { %v204_v42 = vld [vmem:[%s335_s6] ss:$0 sm:$0xff] }
  0x1a   :  { %116 = vmatpush.msra.mxu1 %v97_v9  ;;  %154 = vmatpush.msra.mxu2 %v141_v22 }
  0x1c   :  { %117 = vmatpush.msra.mxu1 %v96_v10  ;;  %155 = vmatpush.msra.mxu2 %v140_v23 }
  0x1e   :  { %118 = vmatpush.msra.mxu1 %v95_v11  ;;  %156 = vmatpush.msra.mxu2 %v139_v24 }
  0x20   :  { %119 = vmatpush.msra.mxu1 %v94_v12  ;;  %157 = vmatpush.msra.mxu2 %v138_v25 }
  0x22   :  { %120 = vmatpush.msra.mxu1 %v93_v13  ;;  %158 = vmatpush.msra.mxu2 %v137_v26 }
  0x24   :  { %121 = vmatpush.msra.mxu1 %v92_v14  ;;  %159 = vmatpush.msra.mxu2 %v136_v27 }
  0x26   :  { %122 = vmatpush.msra.mxu1 %v91_v15  ;;  %160 = vmatpush.msra.mxu2 %v135_v28 }
  0x28   :  { %123 = vmatpush.msra.mxu1 %v90_v16  ;;  %161 = vmatpush.msra.mxu2 %v134_v29 }
  0x2a   :  { %124 = vmatpush.msra.mxu1 %v89_v17  ;;  %162 = vmatpush.msra.mxu2 %v133_v30 }
  0x2c   :  { %163 = vmatpush.msra.mxu2 %v132_v35 }
  0x2e   :  { %164 = vmatpush.msra.mxu2 %v131_v36 }
  0x30   :  { %165 = vmatpush.msra.mxu2 %v130_v37 }
  0x8a   :  { %v85_v32 = vpop.f32.mrf.mxu0 }
  0x8b   :  { %v86_v33 = vadd.f32 %v202_v31, %v85_v32 }
  0x8d   :  { %v88_v34 = vmax.f32 %v86_v33, 0.0 }
  0x8f   :  { %125 = vmatmul.f32.vlgmr.msra.gmra.mxu1 %v88_v34 }
 0x10c   :  { %v126_v39 = vpop.f32.mrf.mxu1 }
 0x10d   :  { %v127_v40 = vadd.f32 %v203_v38, %v126_v39 }
 0x10f   :  { %v129_v41 = vmax.f32 %v127_v40, 0.0 }
 0x111   :  { %166 = vmatmul.f32.vlgmr.msra.gmra.mxu2 %v129_v41 }
 0x194   :  { %v167_v43 = vpop.f32.mrf.mxu2 }
 0x195   :  { %v168_v44 = vadd.f32 %v204_v42, %v167_v43 }
 0x197   :  { %v197_v45 = vmul.f32 -1.442695, %v168_v44 }
 0x199   :  { %205 = vpow2.f32 %v197_v45 }
 0x19f   :  { %v206_v46 = vpop.eup %205 }
 0x1a0   :  { %v173_v47 = vadd.f32 1.0, %v206_v46 }
 0x1a2   :  { %207 = vrcp.f32 %v173_v47  ;;  %v185_v51 = vand.u32 2147483648, %v173_v47  ;;  %v183_v53 = vand.u32 2147483647, %v173_v47  ;;  %vm179_vm2 = vweird.f32 %v173_v47 }
 0x1a4   :  { %v186_v55 = vor.u32 1.1754944e-38, %v185_v51  ;;  %vm184_vm4 = vcmp.eq.f32.partialorder %v183_v53, 8.507059e+37 }
 0x1a8   :  { %v208_v48 = vpop.eup %207 }
 0x1a9   :  { %v175_v49 = vmul.f32 %v208_v48, %v173_v47  ;;  %vm180_vm1 = vweird.f32 %v208_v48 }
 0x1aa   :  { %vm181_vm3 = vmor %vm179_vm2, %vm180_vm1 }
 0x1ab   :  { %v176_v50 = vsub.f32 1.0, %v175_v49 }
 0x1ad   :  { %v177_v52 = vmul.f32 %v208_v48, %v176_v50 }
 0x1af   :  { %v178_v54 = vadd.f32 %v208_v48, %v177_v52 }
 0x1b1   :  { %v182_v56 = vsel %vm181_vm3, %v208_v48, %v178_v54 }
 0x1b2   :  { %v187_v57 = vsel %vm184_vm4, %v186_v55, %v182_v56 }
 0x1b3   :  { %189 = vst [vmem:[%s336_s7] sm:$0xff] %v187_v57 }
 0x1b4   :  { %194 = vsyncpa [#allocation3], 1 }
 0x1b5   :  { %195 = vsyncpa [#allocation5], 1 }

// kernel: _fwd_impl.1
= control target key start
LH: loop header
LB: loop body
LE: loop exit
PB: predicated region body
PF: predicated region fallthrough
CT: control target
= control target key end

     0   :  { %12 = vsyncpa [#allocation3], 0  ;;  %s329_s0 = inlined_call_operand.vmem [shape: f32[8,8], index: 0, kind: input, shape index: {}]   ;;  %s330_s1 = inlined_call_operand.vmem [shape: f32[8,128], index: 1, kind: input, shape index: {}]   ;;  %s331_s2 = inlined_call_operand.vmem [shape: f32[1,128], index: 2, kind: input, shape index: {}]   ;;  %s332_s3 = inlined_call_operand.hbm [shape: f32[128,128], index: 3, kind: input, shape index: {}]   ;;  %s333_s4 = inlined_call_operand.vmem [shape: f32[1,128], index: 4, kind: input, shape index: {}]   ;;  %s334_s5 = inlined_call_operand.hbm [shape: f32[128,128], index: 5, kind: input, shape index: {}]   ;;  %s335_s6 = inlined_call_operand.vmem [shape: f32[1,128], index: 6, kind: input, shape index: {}]   ;;  %s336_s7 = inlined_call_operand.vmem [shape: f32[8,128], index: 7, kind: output, shape index: {}]  }
   0x1   :  { %s24_s26 = sshll.u32 %s332_s3, 4  ;;  %s25_s26 = int_to_ptr.hbm [resolvable:$true] %s24_s26 }
   0x2   :  { %13 = vsyncpa [#allocation5], 0  ;;  %s261_s27 = smov [#allocation2]   ;;  %s39_s8 = sshll.u32 %s334_s5, 4  ;;  %s40_s8 = int_to_ptr.hbm [resolvable:$true] %s39_s8 }
   0x3   :  { %s26_s28 = sshll.u32 %s261_s27, 4  ;;  %s262_s9 = smov 128   ;;  %s27_s28 = int_to_ptr.vmem [resolvable:$true] %s26_s28 }
   0x4   :  { %s263_s10 = smov 8   ;;  %s264_s11 = smov [#allocation4]  }
   0x5   :  { %32 = dma.hbm_to_vmem [thread:$0]  %s25_s26, 2048, %s27_s28, [#allocation3], %s262_s9, %s262_s9, %s263_s10  }
   0x6   :  { %s41_s12 = sshll.u32 %s264_s11, 4  ;;  %s42_s12 = int_to_ptr.vmem [resolvable:$true] %s41_s12 }
   0x7   :  { %47 = dma.hbm_to_vmem [thread:$0]  %s40_s8, 2048, %s42_s12, [#allocation5], %s262_s9, %s262_s9, %s263_s10  }
   0x8   :  { %257 = dma.done.wait [#allocation3], 2048  }
   0x9   :  { %258 = vsyncadd [#allocation3], 4294965248 }
   0xa   :  { %259 = dma.done.wait [#allocation5], 2048  }
   0xb   :  { %260 = vsyncadd [#allocation5], 4294965248  ;;  %vm64_vm0 = vcmask 64512   ;;  %v59_v0 = vld [vmem:[%s330_s1] sm:$0xff]  ;;  %v104_v2 = vld [vmem:[#allocation2 + $0x78] sm:$0xff] }
   0xc   :  { %v58_v1 = vld [vmem:[%s329_s0] sm:$0xff]  ;;  %83 = vmatpush.msra.mxu0 %v59_v0  ;;  %109 = vmatpush.msra.mxu1 %v104_v2  ;;  %v103_v3 = vld [vmem:[#allocation2 + $0x70] sm:$0xff]  ;;  %v102_v4 = vld [vmem:[#allocation2 + $0x68] sm:$0xff] }
   0xd   :  { %196 = vmatmul.msk.f32.vlgmr.msra.gmra.mxu0 %vm64_vm0, %v58_v1  ;;  %v101_v5 = vld [vmem:[#allocation2 + $0x60] sm:$0xff]  ;;  %v100_v6 = vld [vmem:[#allocation2 + $0x58] sm:$0xff]  ;;  %v99_v7 = vld [vmem:[#allocation2 + $0x50] sm:$0xff] }
   0xe   :  { %110 = vmatpush.msra.mxu1 %v103_v3  ;;  %v98_v8 = vld [vmem:[#allocation2 + $0x48] sm:$0xff]  ;;  %v97_v9 = vld [vmem:[#allocation2 + $0x40] sm:$0xff]  ;;  %v96_v10 = vld [vmem:[#allocation2 + $0x38] sm:$0xff] }
   0xf   :  { %v95_v11 = vld [vmem:[#allocation2 + $0x30] sm:$0xff]  ;;  %v94_v12 = vld [vmem:[#allocation2 + $0x28] sm:$0xff]  ;;  %v93_v13 = vld [vmem:[#allocation2 + $0x20] sm:$0xff] }
  0x10   :  { %111 = vmatpush.msra.mxu1 %v102_v4  ;;  %v92_v14 = vld [vmem:[#allocation2 + $0x18] sm:$0xff]  ;;  %v91_v15 = vld [vmem:[#allocation2 + $0x10] sm:$0xff]  ;;  %v90_v16 = vld [vmem:[#allocation2 + $0x8] sm:$0xff] }
  0x11   :  { %v89_v17 = vld [vmem:[#allocation2] sm:$0xff]  ;;  %v145_v18 = vld [vmem:[#allocation4 + $0x78] sm:$0xff]  ;;  %v144_v19 = vld [vmem:[#allocation4 + $0x70] sm:$0xff] }
  0x12   :  { %112 = vmatpush.msra.mxu1 %v101_v5  ;;  %150 = vmatpush.msra.mxu2 %v145_v18  ;;  %v143_v20 = vld [vmem:[#allocation4 + $0x68] sm:$0xff]  ;;  %v142_v21 = vld [vmem:[#allocation4 + $0x60] sm:$0xff]  ;;  %v141_v22 = vld [vmem:[#allocation4 + $0x58] sm:$0xff] }
  0x13   :  { %v140_v23 = vld [vmem:[#allocation4 + $0x50] sm:$0xff]  ;;  %v139_v24 = vld [vmem:[#allocation4 + $0x48] sm:$0xff]  ;;  %v138_v25 = vld [vmem:[#allocation4 + $0x40] sm:$0xff] }
  0x14   :  { %113 = vmatpush.msra.mxu1 %v100_v6  ;;  %151 = vmatpush.msra.mxu2 %v144_v19  ;;  %v137_v26 = vld [vmem:[#allocation4 + $0x38] sm:$0xff]  ;;  %v136_v27 = vld [vmem:[#allocation4 + $0x30] sm:$0xff]  ;;  %v135_v28 = vld [vmem:[#allocation4 + $0x28] sm:$0xff] }
  0x15   :  { %v134_v29 = vld [vmem:[#allocation4 + $0x20] sm:$0xff]  ;;  %v133_v30 = vld [vmem:[#allocation4 + $0x18] sm:$0xff]  ;;  %v132_v35 = vld [vmem:[#allocation4 + $0x10] sm:$0xff] }
  0x16   :  { %114 = vmatpush.msra.mxu1 %v99_v7  ;;  %152 = vmatpush.msra.mxu2 %v143_v20  ;;  %v202_v31 = vld [vmem:[%s331_s2] ss:$0 sm:$0xff]  ;;  %v131_v36 = vld [vmem:[#allocation4 + $0x8] sm:$0xff] }
  0x17   :  { %v130_v37 = vld [vmem:[#allocation4] sm:$0xff] }
  0x18   :  { %115 = vmatpush.msra.mxu1 %v98_v8  ;;  %153 = vmatpush.msra.mxu2 %v142_v21  ;;  %v203_v38 = vld [vmem:[%s333_s4] ss:$0 sm:$0xff] }
  0x19   :  { %v204_v42 = vld [vmem:[%s335_s6] ss:$0 sm:$0xff] }
  0x1a   :  { %116 = vmatpush.msra.mxu1 %v97_v9  ;;  %154 = vmatpush.msra.mxu2 %v141_v22 }
  0x1c   :  { %117 = vmatpush.msra.mxu1 %v96_v10  ;;  %155 = vmatpush.msra.mxu2 %v140_v23 }
  0x1e   :  { %118 = vmatpush.msra.mxu1 %v95_v11  ;;  %156 = vmatpush.msra.mxu2 %v139_v24 }
  0x20   :  { %119 = vmatpush.msra.mxu1 %v94_v12  ;;  %157 = vmatpush.msra.mxu2 %v138_v25 }
  0x22   :  { %120 = vmatpush.msra.mxu1 %v93_v13  ;;  %158 = vmatpush.msra.mxu2 %v137_v26 }
  0x24   :  { %121 = vmatpush.msra.mxu1 %v92_v14  ;;  %159 = vmatpush.msra.mxu2 %v136_v27 }
  0x26   :  { %122 = vmatpush.msra.mxu1 %v91_v15  ;;  %160 = vmatpush.msra.mxu2 %v135_v28 }
  0x28   :  { %123 = vmatpush.msra.mxu1 %v90_v16  ;;  %161 = vmatpush.msra.mxu2 %v134_v29 }
  0x2a   :  { %124 = vmatpush.msra.mxu1 %v89_v17  ;;  %162 = vmatpush.msra.mxu2 %v133_v30 }
  0x2c   :  { %163 = vmatpush.msra.mxu2 %v132_v35 }
  0x2e   :  { %164 = vmatpush.msra.mxu2 %v131_v36 }
  0x30   :  { %165 = vmatpush.msra.mxu2 %v130_v37 }
  0x8a   :  { %v85_v32 = vpop.f32.mrf.mxu0 }
  0x8b   :  { %v86_v33 = vadd.f32 %v202_v31, %v85_v32 }
  0x8d   :  { %v88_v34 = vmax.f32 %v86_v33, 0.0 }
  0x8f   :  { %125 = vmatmul.f32.vlgmr.msra.gmra.mxu1 %v88_v34 }
 0x10c   :  { %v126_v39 = vpop.f32.mrf.mxu1 }
 0x10d   :  { %v127_v40 = vadd.f32 %v203_v38, %v126_v39 }
 0x10f   :  { %v129_v41 = vmax.f32 %v127_v40, 0.0 }
 0x111   :  { %166 = vmatmul.f32.vlgmr.msra.gmra.mxu2 %v129_v41 }
 0x194   :  { %v167_v43 = vpop.f32.mrf.mxu2 }
 0x195   :  { %v168_v44 = vadd.f32 %v204_v42, %v167_v43 }
 0x197   :  { %v197_v45 = vmul.f32 -1.442695, %v168_v44 }
 0x199   :  { %205 = vpow2.f32 %v197_v45 }
 0x19f   :  { %v206_v46 = vpop.eup %205 }
 0x1a0   :  { %v173_v47 = vadd.f32 1.0, %v206_v46 }
 0x1a2   :  { %207 = vrcp.f32 %v173_v47  ;;  %v185_v51 = vand.u32 2147483648, %v173_v47  ;;  %v183_v53 = vand.u32 2147483647, %v173_v47  ;;  %vm179_vm2 = vweird.f32 %v173_v47 }
 0x1a4   :  { %v186_v55 = vor.u32 1.1754944e-38, %v185_v51  ;;  %vm184_vm4 = vcmp.eq.f32.partialorder %v183_v53, 8.507059e+37 }
 0x1a8   :  { %v208_v48 = vpop.eup %207 }
 0x1a9   :  { %v175_v49 = vmul.f32 %v208_v48, %v173_v47  ;;  %vm180_vm1 = vweird.f32 %v208_v48 }
 0x1aa   :  { %vm181_vm3 = vmor %vm179_vm2, %vm180_vm1 }
 0x1ab   :  { %v176_v50 = vsub.f32 1.0, %v175_v49 }
 0x1ad   :  { %v177_v52 = vmul.f32 %v208_v48, %v176_v50 }
 0x1af   :  { %v178_v54 = vadd.f32 %v208_v48, %v177_v52 }
 0x1b1   :  { %v182_v56 = vsel %vm181_vm3, %v208_v48, %v178_v54 }
 0x1b2   :  { %v187_v57 = vsel %vm184_vm4, %v186_v55, %v182_v56 }
 0x1b3   :  { %189 = vst [vmem:[%s336_s7] sm:$0xff] %v187_v57 }
 0x1b4   :  { %194 = vsyncpa [#allocation3], 1 }
 0x1b5   :  { %195 = vsyncpa [#allocation5], 1 }

</bundles_post_ra>
